<compile_context>
chip_gen: v6e
topology: v6e:2x2x1
jax: 0.10.0
libtpu: 0.0.40
codegen_flags: <defaults>
</compile_context>

<pallas_src>
import math

import jax
import jax.numpy as jnp
from jax.experimental import pallas as pl
from jax.experimental.pallas import tpu as pltpu


# ----------------------------- Pallas kernels ------------------------------

def matmul_kernel(a_ref, b_ref, o_ref):
    """(M, K) @ (K, N) -> (M, N), f32 accumulation (used for the separable upsample)."""
    o_ref[...] = jnp.dot(a_ref[...], b_ref[...], preferred_element_type=jnp.float32)


def make_conv_flow_kernel(Hs, Ws):
    """Conv2d(C_feat -> 2, k=3, pad=1) for one frame: tap matmul + fused shift-add.

    Only the (2, Hs*Ws) flow leaves the kernel; the 18-row tap tensor stays in VMEM.
    """
    HWs = Hs * Ws
    PAD = Ws + 1          # >= |max flattened shift|; row-out-of-range taps read zeros

    def kernel(w_ref, x_ref, o_ref, pad_ref):
        # w_ref: (18, C_feat) bf16, rows ordered (ky, kx, out_ch)
        # x_ref: (1, C_feat, HWs) bf16     o_ref: (1, 2, HWs) f32
        # pad_ref: VMEM scratch (18, HWs + 2*PAD) f32
        taps = jnp.dot(w_ref[...], x_ref[0], preferred_element_type=jnp.float32)
        pad_ref[...] = jnp.zeros_like(pad_ref)
        pad_ref[:, PAD:PAD + HWs] = taps
        col = jax.lax.broadcasted_iota(jnp.int32, (1, HWs), 1) % Ws
        acc = jnp.zeros((2, HWs), jnp.float32)
        for ky in range(3):
            for kx in range(3):
                dy, dx = ky - 1, kx - 1
                k = ky * 3 + kx
                s = dy * Ws + dx
                t = pad_ref[2 * k:2 * k + 2, PAD + s:PAD + s + HWs]
                # column mask stops x-shifts bleeding across spatial row boundaries;
                # y-out-of-range reads land in the zero border of the scratch.
                valid = jnp.logical_and(col + dx >= 0, col + dx < Ws)
                acc = acc + jnp.where(valid, t, 0.0)
        o_ref[0] = acc

    return kernel


def make_warp_kernel(C, W):
    """grid_sample(bilinear, border) via separable 2-tap row/col weighted selections."""

    def kernel(idx_ref, wgt_ref, noise_ref, o_ref):
        # idx_ref: (1, 4, DT) int32  rows [y0, y1, x0, x1]
        # wgt_ref: (1, 4, DT) f32    rows [wy0, wy1, wx0, wx1]
        # noise_ref: (1, C*W, H) bf16 with row = c*W + x, col = y
        # o_ref: (1, C, DT) bf16
        H = noise_ref.shape[2]
        dt = idx_ref.shape[2]
        idx = idx_ref[0]
        wgt = wgt_ref[0].astype(jnp.bfloat16)               # bf16 selection weights
        zero = jnp.zeros((), jnp.bfloat16)
        rows_h = jax.lax.broadcasted_iota(jnp.int32, (H, dt), 0)
        sel_y = (jnp.where(rows_h == idx[0:1], wgt[0:1], zero)
                 + jnp.where(rows_h == idx[1:2], wgt[1:2], zero))      # (H, DT) bf16
        rows_w = jax.lax.broadcasted_iota(jnp.int32, (W, dt), 0)
        sel_x = (jnp.where(rows_w == idx[2:3], wgt[2:3], zero)
                 + jnp.where(rows_w == idx[3:4], wgt[3:4], zero))      # (W, DT) bf16
        tmp = jnp.dot(noise_ref[0], sel_y,
                      preferred_element_type=jnp.float32)              # (C*W, DT) f32
        tmp = tmp.reshape(C, W, dt)           # layout no-op when W is a multiple of 8
        out = jnp.sum(tmp * sel_x[None].astype(jnp.float32), axis=1)   # (C, DT) f32
        o_ref[0] = out.astype(o_ref.dtype)

    return kernel


def _channel_norm_blend(w_bf16, ni_f32, beta, blend, cden):
    """Channel-standardize (unbiased over C, +1e-6) and blend with independent noise."""
    w = w_bf16.astype(jnp.float32)
    mean_c = jnp.mean(w, axis=0, keepdims=True)
    var_c = jnp.sum((w - mean_c) ** 2, axis=0, keepdims=True) * cden
    inv_std_c = pl.reciprocal(jnp.sqrt(var_c) + 1e-6, approx=True)     # EUP slot
    return beta * (w - mean_c) * inv_std_c + blend * ni_f32


def make_blend_stats_kernel(beta, C):
    blend = math.sqrt(1.0 - beta * beta)
    cden = 1.0 / max(C - 1, 1)

    def kernel(w_ref, ni_ref, s_ref):
        eps = _channel_norm_blend(w_ref[0], ni_ref[0], beta, blend, cden)
        s = jnp.sum(eps)
        ss = jnp.sum(eps * eps)
        row = jax.lax.broadcasted_iota(jnp.int32, (2, 128), 0)
        s_ref[0, 0] = jnp.where(row == 0, s, ss)     # row 0 = sum, row 1 = sum of squares

    return kernel


def make_blend_norm_kernel(beta, C):
    blend = math.sqrt(1.0 - beta * beta)
    cden = 1.0 / max(C - 1, 1)

    def kernel(st_ref, w_ref, ni_ref, o_ref):
        # st_ref: SMEM (B, 2) f32 with [mean, 1/(std + 1e-6)] per batch
        b = pl.program_id(0)
        eps = _channel_norm_blend(w_ref[0], ni_ref[0], beta, blend, cden)
        o_ref[0] = (eps - st_ref[b, 0]) * st_ref[b, 1]

    return kernel


# ------------------------------- JAX glue -----------------------------------

def interp_matrix(out_size, in_size):
    """Row-interpolation matrix for F.interpolate(mode='bilinear', align_corners=False)."""
    scale = in_size / out_size
    dst = jnp.arange(out_size, dtype=jnp.float32)
    src = jnp.maximum(scale * (dst + 0.5) - 0.5, 0.0)
    i0 = jnp.floor(src)
    i1 = jnp.minimum(i0 + 1.0, in_size - 1.0)
    l1 = src - i0
    l0 = 1.0 - l1
    A = (jax.nn.one_hot(i0.astype(jnp.int32), in_size, dtype=jnp.float32) * l0[:, None]
         + jax.nn.one_hot(i1.astype(jnp.int32), in_size, dtype=jnp.float32) * l1[:, None])
    return A  # (out_size, in_size)


def _full_matmul(a_bf16, b_bf16):
    """Small whole-array matmul (operands comfortably fit VMEM)."""
    M, K = a_bf16.shape
    _, N = b_bf16.shape
    return pl.pallas_call(
        matmul_kernel,
        out_shape=jax.ShapeDtypeStruct((M, N), jnp.float32),
        grid=(1,),
        in_specs=[pl.BlockSpec((M, K), lambda i: (0, 0)),
                  pl.BlockSpec((K, N), lambda i: (0, 0))],
        out_specs=pl.BlockSpec((M, N), lambda i: (0, 0)),
    )(a_bf16, b_bf16)


def _pick_lane_tile(total, bytes_per_lane, budget_bytes):
    """Largest 128-multiple divisor of `total` whose per-step VMEM cost fits `budget`,
    preferring >= 2 grid steps (keeps pipelining alive / both v7x TensorCores busy)."""
    cands = [c for c in (8192, 4096, 2048, 1024, 512, 256, 128) if total % c == 0]
    if not cands:
        return total
    fit = [c for c in cands if c * bytes_per_lane <= budget_bytes]
    if not fit:
        return cands[-1]
    for c in fit:
        if total // c >= 2:
            return c
    return fit[-1]


def noise_shaper_forward(stc_feat, noise_first_frame, noise_ind, conv_w, conv_b,
                         beta=0.7):
    B, T, C_feat, Hs, Ws = stc_feat.shape
    _, C, H, W = noise_first_frame.shape
    BT, HWs, HW, THW = B * T, Hs * Ws, H * W, T * H * W

    # ---- 1. flow_predictor Conv2d(C_feat->2, k=3, pad=1), fused shift-add epilogue ----
    x = stc_feat.reshape(BT, C_feat, HWs).astype(jnp.bfloat16)
    w18 = conv_w.transpose(2, 3, 0, 1).reshape(18, C_feat).astype(jnp.bfloat16)
    flow_lo = pl.pallas_call(
        make_conv_flow_kernel(Hs, Ws),
        out_shape=jax.ShapeDtypeStruct((BT, 2, HWs), jnp.float32),
        grid=(BT,),
        in_specs=[pl.BlockSpec((18, C_feat), lambda n: (0, 0)),
                  pl.BlockSpec((1, C_feat, HWs), lambda n: (n, 0, 0))],
        out_specs=pl.BlockSpec((1, 2, HWs), lambda n: (n, 0, 0)),
        scratch_shapes=[pltpu.VMEM((18, HWs + 2 * (Ws + 1)), jnp.float32)],
        compiler_params=pltpu.CompilerParams(dimension_semantics=("parallel",)),
    )(w18, x)
    flow_lo = flow_lo + conv_b.astype(jnp.float32).reshape(1, 2, 1)     # bias (tiny add)

    # ---- 2. bilinear upsample (align_corners=False): separable Y = A_h @ X @ A_w^T ----
    A_hT = interp_matrix(H, Hs).T.astype(jnp.bfloat16)     # (Hs, H)
    A_wT = interp_matrix(W, Ws).T.astype(jnp.bfloat16)     # (Ws, W)
    F2 = BT * 2
    lhs1 = (flow_lo.reshape(BT, 2, Hs, Ws).transpose(0, 1, 3, 2)
            .reshape(F2 * Ws, Hs).astype(jnp.bfloat16))
    up1 = _full_matmul(lhs1, A_hT)                          # (F2*Ws, H) f32
    lhs2 = (up1.reshape(BT, 2, Ws, H).transpose(0, 1, 3, 2)
            .reshape(F2 * H, Ws).astype(jnp.bfloat16))
    up2 = _full_matmul(lhs2, A_wT)                          # (F2*H, W) f32
    flow_up = up2.reshape(BT, 2, H, W)

    # ---- 3. grid_sample(bilinear, border): tap indices/weights in glue (tiny) ----
    flow_x, flow_y = flow_up[:, 0], flow_up[:, 1]
    lin_y = jnp.linspace(-1.0, 1.0, H, dtype=jnp.float32)
    lin_x = jnp.linspace(-1.0, 1.0, W, dtype=jnp.float32)
    gx = lin_x[None, None, :] + flow_x / (W / 2.0)          # (BT, H, W)
    gy = lin_y[None, :, None] + flow_y / (H / 2.0)
    ix = jnp.clip((gx + 1.0) * W / 2.0 - 0.5, 0.0, W - 1.0)  # border padding == clip
    iy = jnp.clip((gy + 1.0) * H / 2.0 - 0.5, 0.0, H - 1.0)
    x0 = jnp.floor(ix)
    y0 = jnp.floor(iy)
    x1 = jnp.minimum(x0 + 1.0, W - 1.0)
    y1 = jnp.minimum(y0 + 1.0, H - 1.0)
    wx1 = ix - x0
    wy1 = iy - y0
    idx = jnp.stack([y0, y1, x0, x1], axis=1).astype(jnp.int32).reshape(BT, 4, HW)
    wgt = jnp.stack([1.0 - wy1, wy1, 1.0 - wx1, wx1],
                    axis=1).astype(jnp.float32).reshape(BT, 4, HW)

    noise_cwh = (noise_first_frame.transpose(0, 1, 3, 2)     # (B, C, W, H)
                 .reshape(B, C * W, H).astype(jnp.bfloat16))

    # VMEM-aware dst tile: streams (idx/wgt/out, double-buffered) + in-kernel temporaries
    bpl_warp = 2 * (16 + 16 + 2 * C) + 2 * (H + W) + 4 * C * W + 8 * C + 64
    warp_budget = max((10 << 20) - 4 * C * W * H, 1 << 20)
    dt = _pick_lane_tile(HW, bpl_warp, warp_budget)
    nj = HW // dt
    warped = pl.pallas_call(
        make_warp_kernel(C, W),
        out_shape=jax.ShapeDtypeStruct((B, C, THW), jnp.bfloat16),  # direct final layout
        grid=(BT, nj),
        in_specs=[pl.BlockSpec((1, 4, dt), lambda n, j: (n, 0, j)),
                  pl.BlockSpec((1, 4, dt), lambda n, j: (n, 0, j)),
                  pl.BlockSpec((1, C * W, H), lambda n, j: (n // T, 0, 0))],
        out_specs=pl.BlockSpec((1, C, dt),
                               lambda n, j: (n // T, 0, (n % T) * nj + j)),
        compiler_params=pltpu.CompilerParams(
            dimension_semantics=("parallel", "parallel"),
            vmem_limit_bytes=32 * 1024 * 1024),
        cost_estimate=pl.CostEstimate(
            flops=int(2 * C * W * H * HW * BT),
            transcendentals=0,
            bytes_accessed=int(BT * HW * 32 + B * C * W * H * 2 + B * C * THW * 2)),
    )(idx, wgt, noise_cwh)

    # ---- 4. channel-norm + blend + per-batch re-normalize (two-pass, tiled) ----
    nind = noise_ind.reshape(B, C, THW).astype(jnp.float32)
    hw_t = _pick_lane_tile(THW, 36 * C + 64, 10 << 20)
    ntile = THW // hw_t

    stats = pl.pallas_call(
        make_blend_stats_kernel(beta, C),
        out_shape=jax.ShapeDtypeStruct((B, ntile, 2, 128), jnp.float32),
        grid=(B, ntile),
        in_specs=[pl.BlockSpec((1, C, hw_t), lambda b, j: (b, 0, j)),
                  pl.BlockSpec((1, C, hw_t), lambda b, j: (b, 0, j))],
        out_specs=pl.BlockSpec((1, 1, 2, 128), lambda b, j: (b, j, 0, 0)),
        compiler_params=pltpu.CompilerParams(
            dimension_semantics=("parallel", "parallel")),
    )(warped, nind)

    n_total = float(C * THW)
    gmean = stats[:, :, 0, 0].sum(axis=1) / n_total
    gvar = (stats[:, :, 1, 0].sum(axis=1) - n_total * gmean * gmean) / max(n_total - 1.0, 1.0)
    ginv = 1.0 / (jnp.sqrt(jnp.maximum(gvar, 0.0)) + 1e-6)
    stats_b = jnp.stack([gmean, ginv], axis=1).astype(jnp.float32)      # (B, 2)

    out = pl.pallas_call(
        make_blend_norm_kernel(beta, C),
        out_shape=jax.ShapeDtypeStruct((B, C, THW), jnp.float32),
        grid=(B, ntile),
        in_specs=[pl.BlockSpec(memory_space=pltpu.MemorySpace.SMEM),
                  pl.BlockSpec((1, C, hw_t), lambda b, j: (b, 0, j)),
                  pl.BlockSpec((1, C, hw_t), lambda b, j: (b, 0, j))],
        out_specs=pl.BlockSpec((1, C, hw_t), lambda b, j: (b, 0, j)),
        compiler_params=pltpu.CompilerParams(
            dimension_semantics=("parallel", "parallel")),
    )(stats_b, warped, nind)
    return out.reshape(B, C, T, H, W)


# --------------------------------- demo --------------------------------------

if __name__ == "__main__":
    key = jax.random.PRNGKey(0)
    k1, k2, k3, k4, k5 = jax.random.split(key, 5)

    # small shapes consistent with the module
    B, T, C_feat, Hs, Ws = 2, 4, 8, 8, 8
    C, H, W = 4, 16, 16
    beta = 0.7

    stc_feat = jax.random.normal(k1, (B, T, C_feat, Hs, Ws), jnp.float32)
    noise_first = jax.random.normal(k2, (B, C, H, W), jnp.float32)
    noise_ind = jax.random.normal(k3, (B, C, T, H, W), jnp.float32)

    # deterministic "flow_predictor" Conv2d(C_feat -> 2, k=3) parameters
    conv_w = 0.1 * jax.random.normal(k4, (2, C_feat, 3, 3), jnp.float32)
    conv_b = 0.1 * jax.random.normal(k5, (2,), jnp.float32)

    out = noise_shaper_forward(stc_feat, noise_first, noise_ind, conv_w, conv_b, beta)
    out = jax.block_until_ready(out)

    assert out.shape == (B, C, T, H, W), out.shape
    assert bool(jnp.all(jnp.isfinite(out)))
    # per-batch normalization sanity: mean ~ 0, std ~ 1 by construction
    per_b = out.reshape(B, -1)
    assert float(jnp.max(jnp.abs(jnp.mean(per_b, axis=1)))) < 1e-3
    assert float(jnp.max(jnp.abs(jnp.std(per_b, axis=1) - 1.0))) < 2e-2
    print("KERNEL_OK")
</pallas_src>

<mosaic_0001>
module attributes {stable_mosaic.version = 11 : i64} {
  func.func @kernel(%arg0: i32, %arg1: memref<18x8xbf16, #tpu.memory_space<vmem>>, %arg2: memref<1x8x64xbf16, #tpu.memory_space<vmem>>, %arg3: memref<1x2x64xf32, #tpu.memory_space<vmem>>, %arg4: memref<18x82xf32, #tpu.memory_space<vmem>>) attributes {dimension_semantics = [#tpu.dimension_semantics<parallel>], iteration_bounds = array<i64: 8>, scalar_prefetch = 0 : i64, scratch_operands = 1 : i64, tpu.core_type = #tpu.core_type<tc>, window_params = [{pipeline_mode = #tpu.pipeline_mode<synchronous>, transform_indices = @transform_0, window_bounds = array<i64: 18, 8>}, {transform_indices = @transform_1, window_bounds = array<i64: 1, 8, 64>}, {transform_indices = @transform_2, window_bounds = array<i64: 1, 2, 64>}]} {
    %c0 = arith.constant 0 : index
    %c0_0 = arith.constant 0 : index
    %0 = vector.load %arg1[%c0, %c0_0] : memref<18x8xbf16, #tpu.memory_space<vmem>>, vector<18x8xbf16>
    %c0_1 = arith.constant 0 : index
    %c0_2 = arith.constant 0 : index
    %c0_3 = arith.constant 0 : index
    %1 = vector.load %arg2[%c0_1, %c0_2, %c0_3] : memref<1x8x64xbf16, #tpu.memory_space<vmem>>, vector<1x8x64xbf16>
    %2 = vector.shape_cast %1 : vector<1x8x64xbf16> to vector<8x64xbf16>
    %cst = arith.constant dense<0.000000e+00> : vector<18x64xf32>
    %3 = tpu.matmul %0, %2, %cst {dimension_numbers = #tpu.dot_dimension_numbers<[1], [0], [0], [1], [0, 0, 1, 1], [], []>} : vector<18x8xbf16>, vector<8x64xbf16>, vector<18x64xf32> -> vector<18x64xf32>
    %cst_4 = arith.constant 0.000000e+00 : f32
    %4 = vector.broadcast %cst_4 : f32 to vector<18x82xf32>
    %c0_5 = arith.constant 0 : index
    %c0_6 = arith.constant 0 : index
    %5 = vector.load %arg4[%c0_5, %c0_6] : memref<18x82xf32, #tpu.memory_space<vmem>>, vector<18x82xf32>
    tpu.vector_store %arg4[%c0_5, %c0_6], %4 {strides = array<i32>} : memref<18x82xf32, #tpu.memory_space<vmem>>, vector<18x82xf32>,
    %c0_7 = arith.constant 0 : index
    %c9 = arith.constant 9 : index
    %6 = vector.load %arg4[%c0_7, %c9] : memref<18x82xf32, #tpu.memory_space<vmem>>, vector<18x64xf32>
    tpu.vector_store %arg4[%c0_7, %c9], %3 {strides = array<i32>} : memref<18x82xf32, #tpu.memory_space<vmem>>, vector<18x64xf32>,
    %7 = tpu.iota {dimensions = array<i32: 1>} : vector<1x64xi32>
    %c8_i32 = arith.constant 8 : i32
    %c0_i32 = arith.constant 0 : i32
    %8 = arith.cmpi eq, %c8_i32, %c0_i32 : i32
    %c1_i32 = arith.constant 1 : i32
    %9 = arith.select %8, %c1_i32, %c8_i32 : i32
    %10 = vector.broadcast %9 : i32 to vector<1x64xi32>
    %11 = arith.remsi %7, %10 : vector<1x64xi32>
    %c0_i32_8 = arith.constant 0 : i32
    %12 = vector.broadcast %c0_i32_8 : i32 to vector<1x64xi32>
    %13 = arith.cmpi ne, %11, %12 : vector<1x64xi32>
    %c0_i32_9 = arith.constant 0 : i32
    %14 = vector.broadcast %c0_i32_9 : i32 to vector<1x64xi32>
    %15 = arith.cmpi slt, %11, %14 : vector<1x64xi32>
    %c0_i32_10 = arith.constant 0 : i32
    %16 = arith.cmpi slt, %9, %c0_i32_10 : i32
    %17 = vector.broadcast %16 : i1 to vector<1x64xi1>
    %18 = vector.broadcast %17 : vector<1x64xi1> to vector<1x64xi1>
    %19 = arith.xori %15, %18 : vector<1x64xi1>
    %20 = arith.andi %19, %13 : vector<1x64xi1>
    %21 = vector.broadcast %9 : i32 to vector<1x64xi32>
    %22 = arith.addi %11, %21 : vector<1x64xi32>
    %23 = arith.select %20, %22, %11 : vector<1x64xi1>, vector<1x64xi32>
    %cst_11 = arith.constant 0.000000e+00 : f32
    %24 = vector.broadcast %cst_11 : f32 to vector<2x64xf32>
    %c0_12 = arith.constant 0 : index
    %c0_13 = arith.constant 0 : index
    %25 = vector.load %arg4[%c0_12, %c0_13] : memref<18x82xf32, #tpu.memory_space<vmem>>, vector<2x64xf32>
    %c-1_i32 = arith.constant -1 : i32
    %26 = vector.broadcast %c-1_i32 : i32 to vector<1x64xi32>
    %27 = arith.addi %23, %26 : vector<1x64xi32>
    %c0_i32_14 = arith.constant 0 : i32
    %28 = vector.broadcast %c0_i32_14 : i32 to vector<1x64xi32>
    %29 = arith.cmpi sge, %27, %28 : vector<1x64xi32>
    %c-1_i32_15 = arith.constant -1 : i32
    %30 = vector.broadcast %c-1_i32_15 : i32 to vector<1x64xi32>
    %31 = arith.addi %23, %30 : vector<1x64xi32>
    %c8_i32_16 = arith.constant 8 : i32
    %32 = vector.broadcast %c8_i32_16 : i32 to vector<1x64xi32>
    %33 = arith.cmpi slt, %31, %32 : vector<1x64xi32>
    %34 = arith.andi %29, %33 : vector<1x64xi1>
    %cst_17 = arith.constant 0.000000e+00 : f32
    %35 = vector.shape_cast %34 : vector<1x64xi1> to vector<1x64xi1>
    %36 = vector.broadcast %35 : vector<1x64xi1> to vector<2x64xi1>
    %37 = vector.broadcast %cst_17 : f32 to vector<2x64xf32>
    %38 = arith.select %36, %25, %37 : vector<2x64xi1>, vector<2x64xf32>
    %39 = arith.addf %24, %38 : vector<2x64xf32>
    %c2 = arith.constant 2 : index
    %c1 = arith.constant 1 : index
    %40 = vector.load %arg4[%c2, %c1] : memref<18x82xf32, #tpu.memory_space<vmem>>, vector<2x64xf32>
    %c0_i32_18 = arith.constant 0 : i32
    %41 = vector.broadcast %c0_i32_18 : i32 to vector<1x64xi32>
    %42 = arith.addi %23, %41 : vector<1x64xi32>
    %c0_i32_19 = arith.constant 0 : i32
    %43 = vector.broadcast %c0_i32_19 : i32 to vector<1x64xi32>
    %44 = arith.cmpi sge, %42, %43 : vector<1x64xi32>
    %c0_i32_20 = arith.constant 0 : i32
    %45 = vector.broadcast %c0_i32_20 : i32 to vector<1x64xi32>
    %46 = arith.addi %23, %45 : vector<1x64xi32>
    %c8_i32_21 = arith.constant 8 : i32
    %47 = vector.broadcast %c8_i32_21 : i32 to vector<1x64xi32>
    %48 = arith.cmpi slt, %46, %47 : vector<1x64xi32>
    %49 = arith.andi %44, %48 : vector<1x64xi1>
    %cst_22 = arith.constant 0.000000e+00 : f32
    %50 = vector.shape_cast %49 : vector<1x64xi1> to vector<1x64xi1>
    %51 = vector.broadcast %50 : vector<1x64xi1> to vector<2x64xi1>
    %52 = vector.broadcast %cst_22 : f32 to vector<2x64xf32>
    %53 = arith.select %51, %40, %52 : vector<2x64xi1>, vector<2x64xf32>
    %54 = arith.addf %39, %53 : vector<2x64xf32>
    %c4 = arith.constant 4 : index
    %c2_23 = arith.constant 2 : index
    %55 = vector.load %arg4[%c4, %c2_23] : memref<18x82xf32, #tpu.memory_space<vmem>>, vector<2x64xf32>
    %c1_i32_24 = arith.constant 1 : i32
    %56 = vector.broadcast %c1_i32_24 : i32 to vector<1x64xi32>
    %57 = arith.addi %23, %56 : vector<1x64xi32>
    %c0_i32_25 = arith.constant 0 : i32
    %58 = vector.broadcast %c0_i32_25 : i32 to vector<1x64xi32>
    %59 = arith.cmpi sge, %57, %58 : vector<1x64xi32>
    %c1_i32_26 = arith.constant 1 : i32
    %60 = vector.broadcast %c1_i32_26 : i32 to vector<1x64xi32>
    %61 = arith.addi %23, %60 : vector<1x64xi32>
    %c8_i32_27 = arith.constant 8 : i32
    %62 = vector.broadcast %c8_i32_27 : i32 to vector<1x64xi32>
    %63 = arith.cmpi slt, %61, %62 : vector<1x64xi32>
    %64 = arith.andi %59, %63 : vector<1x64xi1>
    %cst_28 = arith.constant 0.000000e+00 : f32
    %65 = vector.shape_cast %64 : vector<1x64xi1> to vector<1x64xi1>
    %66 = vector.broadcast %65 : vector<1x64xi1> to vector<2x64xi1>
    %67 = vector.broadcast %cst_28 : f32 to vector<2x64xf32>
    %68 = arith.select %66, %55, %67 : vector<2x64xi1>, vector<2x64xf32>
    %69 = arith.addf %54, %68 : vector<2x64xf32>
    %c6 = arith.constant 6 : index
    %c8 = arith.constant 8 : index
    %70 = vector.load %arg4[%c6, %c8] : memref<18x82xf32, #tpu.memory_space<vmem>>, vector<2x64xf32>
    %c-1_i32_29 = arith.constant -1 : i32
    %71 = vector.broadcast %c-1_i32_29 : i32 to vector<1x64xi32>
    %72 = arith.addi %23, %71 : vector<1x64xi32>
    %c0_i32_30 = arith.constant 0 : i32
    %73 = vector.broadcast %c0_i32_30 : i32 to vector<1x64xi32>
    %74 = arith.cmpi sge, %72, %73 : vector<1x64xi32>
    %c-1_i32_31 = arith.constant -1 : i32
    %75 = vector.broadcast %c-1_i32_31 : i32 to vector<1x64xi32>
    %76 = arith.addi %23, %75 : vector<1x64xi32>
    %c8_i32_32 = arith.constant 8 : i32
    %77 = vector.broadcast %c8_i32_32 : i32 to vector<1x64xi32>
    %78 = arith.cmpi slt, %76, %77 : vector<1x64xi32>
    %79 = arith.andi %74, %78 : vector<1x64xi1>
    %cst_33 = arith.constant 0.000000e+00 : f32
    %80 = vector.shape_cast %79 : vector<1x64xi1> to vector<1x64xi1>
    %81 = vector.broadcast %80 : vector<1x64xi1> to vector<2x64xi1>
    %82 = vector.broadcast %cst_33 : f32 to vector<2x64xf32>
    %83 = arith.select %81, %70, %82 : vector<2x64xi1>, vector<2x64xf32>
    %84 = arith.addf %69, %83 : vector<2x64xf32>
    %c8_34 = arith.constant 8 : index
    %c9_35 = arith.constant 9 : index
    %85 = vector.load %arg4[%c8_34, %c9_35] : memref<18x82xf32, #tpu.memory_space<vmem>>, vector<2x64xf32>
    %c0_i32_36 = arith.constant 0 : i32
    %86 = vector.broadcast %c0_i32_36 : i32 to vector<1x64xi32>
    %87 = arith.addi %23, %86 : vector<1x64xi32>
    %c0_i32_37 = arith.constant 0 : i32
    %88 = vector.broadcast %c0_i32_37 : i32 to vector<1x64xi32>
    %89 = arith.cmpi sge, %87, %88 : vector<1x64xi32>
    %c0_i32_38 = arith.constant 0 : i32
    %90 = vector.broadcast %c0_i32_38 : i32 to vector<1x64xi32>
    %91 = arith.addi %23, %90 : vector<1x64xi32>
    %c8_i32_39 = arith.constant 8 : i32
    %92 = vector.broadcast %c8_i32_39 : i32 to vector<1x64xi32>
    %93 = arith.cmpi slt, %91, %92 : vector<1x64xi32>
    %94 = arith.andi %89, %93 : vector<1x64xi1>
    %cst_40 = arith.constant 0.000000e+00 : f32
    %95 = vector.shape_cast %94 : vector<1x64xi1> to vector<1x64xi1>
    %96 = vector.broadcast %95 : vector<1x64xi1> to vector<2x64xi1>
    %97 = vector.broadcast %cst_40 : f32 to vector<2x64xf32>
    %98 = arith.select %96, %85, %97 : vector<2x64xi1>, vector<2x64xf32>
    %99 = arith.addf %84, %98 : vector<2x64xf32>
    %c10 = arith.constant 10 : index
    %c10_41 = arith.constant 10 : index
    %100 = vector.load %arg4[%c10, %c10_41] : memref<18x82xf32, #tpu.memory_space<vmem>>, vector<2x64xf32>
    %c1_i32_42 = arith.constant 1 : i32
    %101 = vector.broadcast %c1_i32_42 : i32 to vector<1x64xi32>
    %102 = arith.addi %23, %101 : vector<1x64xi32>
    %c0_i32_43 = arith.constant 0 : i32
    %103 = vector.broadcast %c0_i32_43 : i32 to vector<1x64xi32>
    %104 = arith.cmpi sge, %102, %103 : vector<1x64xi32>
    %c1_i32_44 = arith.constant 1 : i32
    %105 = vector.broadcast %c1_i32_44 : i32 to vector<1x64xi32>
    %106 = arith.addi %23, %105 : vector<1x64xi32>
    %c8_i32_45 = arith.constant 8 : i32
    %107 = vector.broadcast %c8_i32_45 : i32 to vector<1x64xi32>
    %108 = arith.cmpi slt, %106, %107 : vector<1x64xi32>
    %109 = arith.andi %104, %108 : vector<1x64xi1>
    %cst_46 = arith.constant 0.000000e+00 : f32
    %110 = vector.shape_cast %109 : vector<1x64xi1> to vector<1x64xi1>
    %111 = vector.broadcast %110 : vector<1x64xi1> to vector<2x64xi1>
    %112 = vector.broadcast %cst_46 : f32 to vector<2x64xf32>
    %113 = arith.select %111, %100, %112 : vector<2x64xi1>, vector<2x64xf32>
    %114 = arith.addf %99, %113 : vector<2x64xf32>
    %c12 = arith.constant 12 : index
    %c16 = arith.constant 16 : index
    %115 = vector.load %arg4[%c12, %c16] : memref<18x82xf32, #tpu.memory_space<vmem>>, vector<2x64xf32>
    %c-1_i32_47 = arith.constant -1 : i32
    %116 = vector.broadcast %c-1_i32_47 : i32 to vector<1x64xi32>
    %117 = arith.addi %23, %116 : vector<1x64xi32>
    %c0_i32_48 = arith.constant 0 : i32
    %118 = vector.broadcast %c0_i32_48 : i32 to vector<1x64xi32>
    %119 = arith.cmpi sge, %117, %118 : vector<1x64xi32>
    %c-1_i32_49 = arith.constant -1 : i32
    %120 = vector.broadcast %c-1_i32_49 : i32 to vector<1x64xi32>
    %121 = arith.addi %23, %120 : vector<1x64xi32>
    %c8_i32_50 = arith.constant 8 : i32
    %122 = vector.broadcast %c8_i32_50 : i32 to vector<1x64xi32>
    %123 = arith.cmpi slt, %121, %122 : vector<1x64xi32>
    %124 = arith.andi %119, %123 : vector<1x64xi1>
    %cst_51 = arith.constant 0.000000e+00 : f32
    %125 = vector.shape_cast %124 : vector<1x64xi1> to vector<1x64xi1>
    %126 = vector.broadcast %125 : vector<1x64xi1> to vector<2x64xi1>
    %127 = vector.broadcast %cst_51 : f32 to vector<2x64xf32>
    %128 = arith.select %126, %115, %127 : vector<2x64xi1>, vector<2x64xf32>
    %129 = arith.addf %114, %128 : vector<2x64xf32>
    %c14 = arith.constant 14 : index
    %c17 = arith.constant 17 : index
    %130 = vector.load %arg4[%c14, %c17] : memref<18x82xf32, #tpu.memory_space<vmem>>, vector<2x64xf32>
    %c0_i32_52 = arith.constant 0 : i32
    %131 = vector.broadcast %c0_i32_52 : i32 to vector<1x64xi32>
    %132 = arith.addi %23, %131 : vector<1x64xi32>
    %c0_i32_53 = arith.constant 0 : i32
    %133 = vector.broadcast %c0_i32_53 : i32 to vector<1x64xi32>
    %134 = arith.cmpi sge, %132, %133 : vector<1x64xi32>
    %c0_i32_54 = arith.constant 0 : i32
    %135 = vector.broadcast %c0_i32_54 : i32 to vector<1x64xi32>
    %136 = arith.addi %23, %135 : vector<1x64xi32>
    %c8_i32_55 = arith.constant 8 : i32
    %137 = vector.broadcast %c8_i32_55 : i32 to vector<1x64xi32>
    %138 = arith.cmpi slt, %136, %137 : vector<1x64xi32>
    %139 = arith.andi %134, %138 : vector<1x64xi1>
    %cst_56 = arith.constant 0.000000e+00 : f32
    %140 = vector.shape_cast %139 : vector<1x64xi1> to vector<1x64xi1>
    %141 = vector.broadcast %140 : vector<1x64xi1> to vector<2x64xi1>
    %142 = vector.broadcast %cst_56 : f32 to vector<2x64xf32>
    %143 = arith.select %141, %130, %142 : vector<2x64xi1>, vector<2x64xf32>
    %144 = arith.addf %129, %143 : vector<2x64xf32>
    %c16_57 = arith.constant 16 : index
    %c18 = arith.constant 18 : index
    %145 = vector.load %arg4[%c16_57, %c18] : memref<18x82xf32, #tpu.memory_space<vmem>>, vector<2x64xf32>
    %c1_i32_58 = arith.constant 1 : i32
    %146 = vector.broadcast %c1_i32_58 : i32 to vector<1x64xi32>
    %147 = arith.addi %23, %146 : vector<1x64xi32>
    %c0_i32_59 = arith.constant 0 : i32
    %148 = vector.broadcast %c0_i32_59 : i32 to vector<1x64xi32>
    %149 = arith.cmpi sge, %147, %148 : vector<1x64xi32>
    %c1_i32_60 = arith.constant 1 : i32
    %150 = vector.broadcast %c1_i32_60 : i32 to vector<1x64xi32>
    %151 = arith.addi %23, %150 : vector<1x64xi32>
    %c8_i32_61 = arith.constant 8 : i32
    %152 = vector.broadcast %c8_i32_61 : i32 to vector<1x64xi32>
    %153 = arith.cmpi slt, %151, %152 : vector<1x64xi32>
    %154 = arith.andi %149, %153 : vector<1x64xi1>
    %cst_62 = arith.constant 0.000000e+00 : f32
    %155 = vector.shape_cast %154 : vector<1x64xi1> to vector<1x64xi1>
    %156 = vector.broadcast %155 : vector<1x64xi1> to vector<2x64xi1>
    %157 = vector.broadcast %cst_62 : f32 to vector<2x64xf32>
    %158 = arith.select %156, %145, %157 : vector<2x64xi1>, vector<2x64xf32>
    %159 = arith.addf %144, %158 : vector<2x64xf32>
    %c0_63 = arith.constant 0 : index
    %c0_64 = arith.constant 0 : index
    %c0_65 = arith.constant 0 : index
    %160 = vector.load %arg3[%c0_63, %c0_64, %c0_65] : memref<1x2x64xf32, #tpu.memory_space<vmem>>, vector<1x2x64xf32>
    %161 = vector.shape_cast %160 : vector<1x2x64xf32> to vector<2x64xf32>
    %162 = vector.shape_cast %159 : vector<2x64xf32> to vector<1x2x64xf32>
    tpu.vector_store %arg3[%c0_63, %c0_64, %c0_65], %162 {strides = array<i32>} : memref<1x2x64xf32, #tpu.memory_space<vmem>>, vector<1x2x64xf32>,
    return
  }
  func.func @transform_0(%arg0: i32) -> (i32, i32) {
    %c0_i32 = arith.constant 0 : i32
    %c0_i32_0 = arith.constant 0 : i32
    %c0_i32_1 = arith.constant 0 : i32
    return %c0_i32, %c0_i32_0 : i32, i32
  }
  func.func @transform_1(%arg0: i32) -> (i32, i32, i32) {
    %c0_i32 = arith.constant 0 : i32
    %c0_i32_0 = arith.constant 0 : i32
    %c0_i32_1 = arith.constant 0 : i32
    return %arg0, %c0_i32, %c0_i32_0 : i32, i32, i32
  }
  func.func @transform_2(%arg0: i32) -> (i32, i32, i32) {
    %c0_i32 = arith.constant 0 : i32
    %c0_i32_0 = arith.constant 0 : i32
    %c0_i32_1 = arith.constant 0 : i32
    return %arg0, %c0_i32, %c0_i32_0 : i32, i32, i32
  }
}

</mosaic_0001>

<bundles_post_ra>
// kernel: tpu_custom_call.1
= control target key start
LH: loop header
LB: loop body
LE: loop exit
PB: predicated region body
PF: predicated region fallthrough
CT: control target
= control target key end

     0   :  { %7 = vsyncpa [#allocation4], 0  ;;  %s786_s0 = inlined_call_operand.vmem [shape: bf16[18,8], index: 0, kind: input, shape index: {}]   ;;  %s787_s1 = inlined_call_operand.hbm [shape: bf16[8,8,64], index: 1, kind: input, shape index: {}]   ;;  %s788_s2 = inlined_call_operand.hbm [shape: f32[8,2,64], index: 2, kind: output, shape index: {}]  }
   0x1   :  { %9 = vsyncpa [#allocation4 + $0x1], 0 }
   0x2   :  { %10 = vsyncpa [#allocation5], 0 }
   0x3   :  { %12 = vsyncpa [#allocation5 + $0x1], 0  ;;  %s634_s9 = smov 0   ;;  %s636_s10 = smov 0  }
   0x4   :  { %s638_s11 = smov 0   ;;  %s640_s12 = smov 0  }
   0x5 LB: > { %s655_s13 = sadd.s32 4294967295, %s605_s12   ;;  %s429_s14 = sadd.s32 4294967294, %s605_s12   ;;  %s605_s12 = sphi %s640_s12, %s804_s12   ;;  %s601_s11 = sphi %s638_s11, %s803_s11   ;;  %s597_s10 = sphi %s636_s10, %s802_s10   ;;  %s593_s9 = sphi %s634_s9, %s801_s9  }
   0x6   : > { %s659_s15 = sadd.s32 1, %s605_s12   ;;  %s46_s16 = sadd.s32 1, %s601_s11 }
   0x7   : > { %s43_s17 = ssub.s32 %s605_s12, %s659_s15  ;;  %p53_p0 = scmp.ne.s32.totalorder %s601_s11, %s597_s10 }
   0x8   : > { %p44_p1 = scmp.eq.s32.totalorder %s43_s17, 0  ;;  %p54_p2 = scmp.eq.s32.totalorder %s605_s12, 0 }
   0x9   : > { %p59_p3 = scmp.ne.s32.totalorder %s597_s10, %s593_s9  ;;  %p60_p4 = scmp.eq.s32.totalorder %s655_s13, 0 }
   0xa   : > { %s671_s18 = scalar_select %p44_p1, %s601_s11, %s46_s16  }
   0xb   : > { %p673_p5 = por %p54_p2, %p53_p0  ;;  %p677_p6 = por %p60_p4, %p59_p3 }
   0xc   : > { %p83_p7 = scmp.eq.s32.totalorder %s655_s13, 7  ;;  %p89_p8 = scmp.eq.s32.totalorder %s429_s14, 7 }
   0xd   : > { %s792_s20 = scalar_select %p677_p6, 1, 0 }
   0xe   : > { %p467_p9 = scmp.lt.s32.totalorder %s605_s12, 8  ;;  %p683_p10 = por %p83_p7, %p53_p0 }
   0xf   : > { %p687_p11 = por %p89_p8, %p59_p3  ;;  %s112_s23 = sand.u32 1, %s601_s11  }
  0x10   : > { %s793_s21 = scalar_select %p683_p10, 1, 0 }
  0x11   : > { %s794_s22 = scalar_select %p687_p11, 1, 0 }
  0x12   : > { %s433_s24 = sshll.u32 %s605_s12, 6  ;;  %s432_s25 = sshll.u32 %s112_s23, 2 }
  0x13   : > { %s696_s28 = scalar_lea.hbm %s787_s1, %s433_s24  ;;  %s116_s29 = scalar_lea.vmem [#allocation3], %s432_s25 }
  0x14   : > { %s123_s30 = sshll.u32 %s116_s29, 4  ;;  %p700_p12 = pnand %p467_p9, %p673_p5  ;;  %s704_s30 = int_to_ptr.vmem [resolvable:$true] %s123_s30 }
  0x15   : > { %s113_s4 = scalar_lea.sflag [#allocation4], %s112_s23  ;;  %s513_s5 = scalar_lea.hbm %s696_s28, 64 }
  0x16   : > { %p514_p1 = scmp.ne.s32.totalorder %s696_s28, %s513_s5  ;;  %p515_p2 = pneg %p700_p12 }
  0x17   : > { %s518_s8 = scalar_lea.hbm %s787_s1, 512  ;;  %p519_p5 = scmp.lt.s32.totalorder %s696_s28, %s787_s1 }
  0x18   : > { %p516_p3 = pnand %p515_p2, %p514_p1  ;;  %p520_p7 = scmp.lt.s32.totalorder %s518_s8, %s513_s5 }
  0x1a   : > { %p517_p4 = pneg %p516_p3  ;;  %p521_p8 = por %p520_p7, %p519_p5 }
  0x1c   : > { %p522_p9 = pnand %p521_p8, %p517_p4 }
  0x1e   : > { %525 = shalt.err (!%p522_p9)
}
  0x1f   : > { %s526_s17 = scalar_lea.vmem %s704_s30, 64  ;;  %s607_s19 = smov [#allocation3]  }
  0x20   : > { %p527_p13 = scmp.ne.s32.totalorder %s704_s30, %s526_s17  ;;  %s531_s23 = sshll.u32 %s607_s19, 4  ;;  %s532_s23 = int_to_ptr.vmem [resolvable:$false] %s531_s23 }
  0x21   : > { %s533_s24 = scalar_lea.vmem %s532_s23, 128  ;;  %p534_p3 = scmp.lt.s32.totalorder %s704_s30, %s532_s23 }
  0x22   : > { %p529_p0 = pnand %p527_p13, %p515_p2  ;;  %p535_p11 = scmp.lt.s32.totalorder %s533_s24, %s526_s17 }
  0x24   : > { %p530_p1 = pneg %p529_p0  ;;  %p536_p10 = por %p535_p11, %p534_p3 }
  0x26   : > { %p537_p6 = pnand %p536_p10, %p530_p1 }
  0x28   : > { %540 = shalt.err (!%p537_p6)
}
  0x29   : > { %462 = dma.hbm_to_vmem [thread:$0]  (!%p700_p12), %s696_s28, 64, %s704_s30, %s113_s4  }
  0x2a   : > { %p796_p4 = scmp.lt.s32.totalorder %s605_s12, 9  ;;  %p797_p5 = scmp.ge.s32.totalorder %s605_s12, 1 }
  0x2c   : > { %p129_p13 = pnand %p797_p5, %p796_p4 }
  0x2d   : > { %s731_s25 = sand.u32 (!%p129_p13), 1, %s597_s10   ;;  %p798_p6 = scmp.ne.s32.totalorder (!%p129_p13), %s792_s20, 0 }
  0x2e   : > { %132 = sbr.rel (%p129_p13) target bundleno = 520 (0x208), region = 28  ;;  %s435_s26 = sshll.u32 (!%p129_p13), %s731_s25, 2 }
  0x2f   : > { %s135_s27 = scalar_lea.sflag (!%p129_p13), [#allocation4], %s731_s25  ;;  %s138_s29 = scalar_lea.vmem (!%p129_p13), [#allocation3], %s435_s26 }
  0x33   : > { %584 = dma.done.wait (%p798_p6), %s135_s27, 64  }
  0x34   : > { %586 = vsyncadd (%p798_p6), %s135_s27, 4294967232  ;;  %vm179_vm0 = vcmask 1043456   ;;  %vm172_vm1 = vcmask 64512   ;;  %v163_v0 = vld [vmem:[%s138_s29] sm:$0xf]  ;;  %v511_v2 = vld [vmem:[%s786_s0] sm:$0xff]   ;;  %v253_v20 = vlaneseq }
  0x35   : > { %454 = vmatprep.subr.msk.bf16.mxu0 %vm179_vm0, %v163_v0  ;;  %v181_v1 = vsel %vm179_vm0, %v163_v0, 0  ;;  %v512_v3 = vld [vmem:[%s786_s0 + $0x8] ss:$0 sps:$4 sm:$0x11]   ;;  %450 = vmatprep.mubr.msk.bf16.mxu0 %vm172_vm1, %v511_v2  ;;  %vm234_vm2 = vcmask 664576   ;;  %v608_v4 = vmov 0.0  }
  0x36   : > { %449 = vmatpush3.bf16.msra.mxu0 %v181_v1  ;;  %235 = vst.msk [vmem:[#allocation2 + $0x10] sm:$0x3] %vm234_vm2, %v608_v4  ;;  %vm231_vm3 = vcmask 670720   ;;  %s609_s20 = smov 9   ;;  %vm251_vm4 = vcmask 590920   ;;  %vm248_vm5 = vcmask 597064  }
  0x37   : > { %232 = vst.msk [vmem:[#allocation2] sm:$0xff] %vm231_vm3, %v608_v4  ;;  %233 = vst.msk [vmem:[#allocation2 + $0x8] sm:$0xff] %vm231_vm3, %v608_v4  ;;  %s610_s5 = smov 127   ;;  %s611_s6 = smov 126   ;;  %v254_v21 = vand.u32 127, %v253_v20  ;;  %vm343_vm8 = vcmask 517120  }
  0x38   : > { %s612_s7 = smov 120   ;;  %s613_s8 = smov 119  }
  0x39   : > { %451 = vmatmul.mubr.msk.bf16.vlgmr.msra.gmra.mxu0 %vm172_vm1, %v512_v3  ;;  %s614_s14 = smov 118   ;;  %s615_s16 = smov 112   ;;  %v259_v22 = vand.u32 7, %v254_v21 }
  0x3a   : > { %s616_s17 = smov 111   ;;  %s617_s19 = smov 110  }
  0x3b   : > { %v268_v23 = vadd.s32 4294967295, %v259_v22  ;;  %v289_v24 = vadd.s32 1, %v259_v22  ;;  %s436_s23 = sshll.u32 %s731_s25, 1  ;;  %s442_s24 = sshll.u32 %s655_s13, 5 }
  0x3c   : > { %s158_s26 = scalar_lea.vmem [#allocation6], %s436_s23  ;;  %s357_s30 = scalar_lea.hbm %s788_s2, %s442_s24 }
  0x3d   : > { %vm269_vm6 = vcmp.ge.s32.totalorder %v268_v23, 0  ;;  %vm291_vm7 = vcmp.lt.s32.totalorder %v289_v24, 8  ;;  %s359_s27 = sshll.u32 %s158_s26, 4  ;;  %s346_s3 = scalar_lea.sflag [#allocation5], %s731_s25  ;;  %s360_s27 = int_to_ptr.vmem [resolvable:$true] %s359_s27 }
  0x3e   : > { %s541_s4 = scalar_lea.vmem %s360_s27, 32  ;;  %p799_p11 = scmp.ne.s32.totalorder %s793_s21, 0 }
  0x3f   : > { %p542_p10 = scmp.ne.s32.totalorder %s360_s27, %s541_s4  ;;  %s618_s13 = smov [#allocation6]  }
  0x41   : > { %p543_p12 = pnand %p542_p10, %p799_p11 }
  0x43   : > { %p544_p0 = pneg %p543_p12 }
  0xf9   : > { %v452_v5 = vpop.f32.mrf.mxu0 }
  0xfa   : > { %243 = vrot.lane.b32.xlu1 %v452_v5, %s609_s20 }
  0xfb   : > { %v217_v6 = vpop.f32.mrf.mxu0 }
  0xfc   : > { %239 = vrot.lane.b32.xlu0 %v217_v6, %s609_s20 }
  0xfd   : > { %v453_v7 = vpop.f32.mrf.mxu0 }
  0xff   : > { %v220_v8 = vpop.f32.mrf.mxu0 }
 0x100   : > { %241 = vrot.lane.b32.xlu0 %v220_v8, %s609_s20  ;;  %s545_s20 = sshll.u32 %s618_s13, 4  ;;  %s546_s20 = int_to_ptr.vmem [resolvable:$false] %s545_s20 }
 0x101   : > { %p548_p2 = scmp.lt.s32.totalorder %s360_s27, %s546_s20 }
 0x16c   : > { %v244_v9 = vpop.permute.xlu1 %243 }
 0x16d   : > { %252 = vst.msk [vmem:[#allocation2 + $0x10] sm:$0x3] %vm251_vm4, %v244_v9 }
 0x16e   : > { %v240_v10 = vpop.permute.xlu0 %239 }
 0x16f   : > { %249 = vst.msk [vmem:[#allocation2] sm:$0xff] %vm248_vm5, %v240_v10 }
 0x172   : > { %v242_v11 = vpop.permute.xlu0 %241 }
 0x173   : > { %250 = vst.msk [vmem:[#allocation2 + $0x8] sm:$0xff] %vm248_vm5, %v242_v11 }
 0x174   : > { %v336_v19 = vld [vmem:[#allocation2 + $0x10] sm:$0x3] }
 0x176   : > { %v276_v12 = vld [vmem:[#allocation2 + $0x2] sm:$0x3]  ;;  %v288_v13 = vld [vmem:[#allocation2 + $0x4] sm:$0x3]  ;;  %v301_v14 = vld [vmem:[#allocation2 + $0x6] sm:$0x3] }
 0x177   : > { %283 = vrot.lane.b32.xlu1 %v276_v12, %s610_s5  ;;  %296 = vrot.lane.b32.xlu0 %v288_v13, %s611_s6  ;;  %v267_v25 = vld [vmem:[#allocation2] sm:$0x3]  ;;  %s547_s5 = scalar_lea.vmem %s546_s20, 64 }
 0x178   : > { %v274_v27 = vsel %vm269_vm6, %v267_v25, 0.0  ;;  %p549_p7 = scmp.lt.s32.totalorder %s547_s5, %s541_s4 }
 0x17a   : > { %v308_v15 = vld [vmem:[#allocation2 + $0x8] sm:$0x3]  ;;  %v315_v16 = vld [vmem:[#allocation2 + $0xa] sm:$0x3]  ;;  %v322_v17 = vld [vmem:[#allocation2 + $0xc] sm:$0x3]  ;;  %p550_p8 = por %p549_p7, %p548_p2 }
 0x17b   : > { %303 = vrot.lane.b32.xlu1 %v301_v14, %s612_s7  ;;  %310 = vrot.lane.b32.xlu0 %v308_v15, %s613_s8  ;;  %v329_v18 = vld [vmem:[#allocation2 + $0xe] sm:$0x3] }
 0x17c   : > { %p551_p9 = pnand %p550_p8, %p544_p0 }
 0x17f   : > { %317 = vrot.lane.b32.xlu1 %v315_v16, %s614_s14  ;;  %324 = vrot.lane.b32.xlu0 %v322_v17, %s615_s16 }
 0x183   : > { %331 = vrot.lane.b32.xlu1 %v329_v18, %s616_s17  ;;  %338 = vrot.lane.b32.xlu0 %v336_v19, %s617_s19 }
 0x1e9   : > { %v284_v26 = vpop.permute.xlu1 %283  ;;  %v297_v28 = vpop.permute.xlu0 %296 }
 0x1ea   : > { %v287_v29 = vadd.f32 %v284_v26, %v274_v27  ;;  %v299_v30 = vsel %vm291_vm7, %v297_v28, 0.0 }
 0x1ec   : > { %v300_v31 = vadd.f32 %v299_v30, %v287_v29 }
 0x1ed   : > { %v304_v32 = vpop.permute.xlu1 %303  ;;  %v311_v33 = vpop.permute.xlu0 %310 }
 0x1ee   : > { %v306_v34 = vsel %vm269_vm6, %v304_v32, 0.0 }
 0x1ef   : > { %v307_v35 = vadd.f32 %v306_v34, %v300_v31 }
 0x1f1   : > { %v314_v36 = vadd.f32 %v311_v33, %v307_v35  ;;  %v318_v37 = vpop.permute.xlu1 %317  ;;  %v325_v38 = vpop.permute.xlu0 %324 }
 0x1f2   : > { %v320_v39 = vsel %vm291_vm7, %v318_v37, 0.0  ;;  %v327_v41 = vsel %vm269_vm6, %v325_v38, 0.0 }
 0x1f3   : > { %v321_v40 = vadd.f32 %v320_v39, %v314_v36 }
 0x1f5   : > { %v328_v42 = vadd.f32 %v327_v41, %v321_v40  ;;  %v332_v43 = vpop.permute.xlu1 %331  ;;  %v339_v44 = vpop.permute.xlu0 %338 }
 0x1f6   : > { %v341_v46 = vsel %vm291_vm7, %v339_v44, 0.0 }
 0x1f7   : > { %v335_v45 = vadd.f32 %v332_v43, %v328_v42 }
 0x1f9   : > { %v342_v47 = vadd.f32 %v341_v46, %v335_v45 }
 0x1fb   : > { %344 = vst.msk [vmem:[%s158_s26] sm:$0x3] %vm343_vm8, %v342_v47 }
 0x1fc   : > { %554 = shalt.err (!%p551_p9)
}
 0x1fd   : > { %s555_s6 = scalar_lea.hbm %s357_s30, 32  ;;  %s559_s8 = scalar_lea.hbm %s788_s2, 256 }
 0x1fe   : > { %p556_p1 = scmp.ne.s32.totalorder %s357_s30, %s555_s6  ;;  %p560_p5 = scmp.lt.s32.totalorder %s357_s30, %s788_s2 }
 0x1ff   : > { %p561_p13 = scmp.lt.s32.totalorder %s559_s8, %s555_s6 }
 0x200   : > { %p557_p3 = pnand %p556_p1, %p799_p11 }
 0x201   : > { %p562_p6 = por %p561_p13, %p560_p5 }
 0x202   : > { %p558_p4 = pneg %p557_p3 }
 0x204   : > { %p563_p10 = pnand %p562_p6, %p558_p4 }
 0x206   : > { %566 = shalt.err (!%p563_p10)
}
 0x207   : > { %457 = dma.vmem_to_hbm [thread:$0]  (%p799_p11), %s360_s27, 32, %s357_s30, %s346_s3  }
 0x208 PF: > { %p468_p12 = scmp.ge.s32.totalorder %s605_s12, 2  ;;  %s371_s17 = sand.u32 1, %s593_s9  }
 0x209   : > { %p800_p0 = scmp.ne.s32.totalorder %s794_s22, 0  ;;  %s372_s19 = scalar_lea.sflag [#allocation5], %s371_s17 }
 0x20b   : > { %p464_p2 = pnand %p468_p12, %p800_p0 }
 0x20d   : > { %p465_p7 = pneg %p464_p2 }
 0x20f   : > { %588 = dma.done.wait (%p465_p7), %s372_s19, 32  }
 0x210   : > { %590 = vsyncadd (%p465_p7), %s372_s19, 4294967264  ;;  %p15_p8 = scmp.ge.s32.totalorder %s659_s15, 10   ;;  %s801_s9 = smov %s597_s10 }
 0x211   : > { %s802_s10 = smov %s601_s11  ;;  %s803_s11 = smov %s671_s18 }
 0x212   : > { %s804_s12 = smov %s659_s15  ;;  %17 = sbr.rel (!%p15_p8) target bundleno = 5 (0x5), region = 73 }
 0x217   :  { %377 = vsyncpa [#allocation4], 1 }
 0x218   :  { %379 = vsyncpa [#allocation4 + $0x1], 1 }
 0x219   :  { %380 = vsyncpa [#allocation5], 1 }
 0x21a   :  { %382 = vsyncpa [#allocation5 + $0x1], 1 }

</bundles_post_ra>
